<compile_context>
chip_gen: v7x
topology: tpu7x:2x2x1
jax: 0.10.0
libtpu: 0.0.40
codegen_flags: <defaults>
</compile_context>

<pallas_src>
import jax
import jax.numpy as jnp
from jax.experimental import pallas as pl
from jax.experimental.pallas import tpu as pltpu


# ----------------------------- helpers --------------------------------------


def _round_up(n, m):
    return (n + m - 1) // m * m


def _pick_tile_m(batch):
    """Multiple-of-8 tile that gives >=2 grid steps when possible (v7x), <=1024."""
    if batch % 8 == 0:
        for cand in (1024, 512, 256, 128, 64, 32, 16, 8):
            if cand <= batch // 2 and batch % cand == 0:
                return cand
    return batch  # single full tile: block == full array, no (8,128) issue


def _vmem_bytes(prepared, tile_m, in_dim, out_p, compute_dtype, out_dtype,
                weight_bufs):
    wbytes = sum(int(w.size) * w.dtype.itemsize + int(b.size) * b.dtype.itemsize
                 for w, b in prepared)
    io = 2 * tile_m * in_dim * jnp.dtype(compute_dtype).itemsize   # x double-buf
    io += 2 * tile_m * out_p * jnp.dtype(out_dtype).itemsize       # out double-buf
    return weight_bufs * wbytes + io


# --------------------------- parameters -------------------------------------


def generate_model_params(layers, key, dtype=jnp.float32):
    """Deterministic init for an MLP with widths `layers` (list of ints)."""
    params = []
    for i in range(len(layers) - 1):
        fan_in, fan_out = layers[i], layers[i + 1]
        key, kw, kb = jax.random.split(key, 3)
        scale = 1.0 / jnp.sqrt(jnp.array(fan_in, dtype=jnp.float32))
        w = (jax.random.uniform(kw, (fan_in, fan_out), jnp.float32, -1.0, 1.0)
             * scale).astype(dtype)                       # [in, out]
        b = (jax.random.uniform(kb, (1, fan_out), jnp.float32, -1.0, 1.0)
             * scale).astype(dtype)                       # [1, out] (2D for TPU)
        params.append((w, b))
    return params


def prepare_mlp_params(params, compute_dtype=jnp.bfloat16):
    """Pad every layer's output dim to a multiple of 128 (lane-dense) and cast
    weights to the MXU compute dtype. Zero padding is exact: padded activation
    columns are relu(0)=0 and the matching zero rows of the next W contribute
    nothing, so results are unchanged.
    """
    prepared = []
    prev_pad = 0  # rows to add to this layer's in-dim (previous layer's out pad)
    for (w, b) in params:
        fan_in, fan_out = w.shape
        out_p = _round_up(fan_out, 128)
        w_p = jnp.pad(w, ((0, prev_pad), (0, out_p - fan_out))).astype(compute_dtype)
        b_p = jnp.pad(b, ((0, 0), (0, out_p - fan_out))).astype(jnp.float32)
        prepared.append((w_p, b_p))
        prev_pad = out_p - fan_out
    return prepared


# ------------------------------ kernel --------------------------------------


def _make_mlp_kernel(num_layers, compute_dtype):
    """Kernel refs: (x_ref, w1, b1, ..., wN, bN, o_ref). Statically unrolled.

    bf16 (compute_dtype) operands feed the MXU; accumulation, bias add and
    ReLU are f32 on the VPU; the only VMEM writeback is the lane-dense o_ref.
    """

    def kernel(*refs):
        x_ref = refs[0]
        o_ref = refs[-1]
        param_refs = refs[1:-1]
        h = x_ref[...]                                    # compute_dtype
        for i in range(num_layers):
            w = param_refs[2 * i][...]                    # compute_dtype -> MXU
            b = param_refs[2 * i + 1][...]                # f32 (1, out_p) -> VPU
            acc = jnp.dot(h, w, preferred_element_type=jnp.float32) + b
            if i < num_layers - 1:                        # ReLU between hiddens
                h = jnp.maximum(acc, 0.0).astype(compute_dtype)
            else:
                o_ref[...] = acc.astype(o_ref.dtype)      # unmasked 128-lane store

    return kernel


# ----------------------------- wrapper --------------------------------------


def mlp_forward_pallas(x, params, *, tile_m=None, compute_dtype=jnp.bfloat16):
    """Single forward pass of the MLP; all layers fused in one pallas_call."""
    batch, in_dim = x.shape
    num_layers = len(params)
    out_dim = params[-1][0].shape[1]
    out_dtype = x.dtype

    prepared = prepare_mlp_params(params, compute_dtype)
    out_p = prepared[-1][0].shape[1]                      # 128-padded output width

    if tile_m is None:
        tile_m = _pick_tile_m(batch)
    assert batch % tile_m == 0, (batch, tile_m)
    assert tile_m == batch or tile_m % 8 == 0, (
        "tile_m < batch must be a multiple of 8 (f32 sublane)")

    x_c = x.astype(compute_dtype)
    flat_params, param_shapes = [], []
    for w, b in prepared:
        flat_params.extend([w, b])
        param_shapes.extend([w.shape, b.shape])

    kernel = _make_mlp_kernel(num_layers, compute_dtype)

    def build(single_buffer_weights):
        weight_bufs = 1 if single_buffer_weights else 2
        est = _vmem_bytes(prepared, tile_m, in_dim, out_p, compute_dtype,
                          out_dtype, weight_bufs)
        if est > 56 * 2**20:
            # TODO(synk): for weight sets > ~56 MiB (v7x VMEM is 64 MiB), switch
            # to a K/N-tiled accumulator (grid reduction axis + pl.when init)
            # instead of loading whole layer weights per grid step.
            raise NotImplementedError(
                f"weights (~{est >> 20} MiB) exceed v7x VMEM budget; "
                "K/N-tiled weights not implemented")
        vmem_limit = int(min(64 * 2**20, max(32 * 2**20, 2 * est)))

        in_specs = [pl.BlockSpec((tile_m, in_dim), lambda i: (i, 0))]
        for shp in param_shapes:
            if single_buffer_weights:
                # Constant index_map -> weights never change across grid steps;
                # single-buffer them so VMEM holds one copy, not two.
                in_specs.append(pl.BlockSpec(shp, lambda i: (0, 0),
                                             pipeline_mode=pl.Buffered(1)))
            else:
                in_specs.append(pl.BlockSpec(shp, lambda i: (0, 0)))
        out_spec = pl.BlockSpec((tile_m, out_p), lambda i: (i, 0))

        return pl.pallas_call(
            kernel,
            out_shape=jax.ShapeDtypeStruct((batch, out_p), out_dtype),
            grid_spec=pltpu.PrefetchScalarGridSpec(
                num_scalar_prefetch=0,
                grid=(batch // tile_m,),
                in_specs=in_specs,
                out_specs=out_spec,
            ),
            compiler_params=pltpu.CompilerParams(
                dimension_semantics=("parallel",),
                vmem_limit_bytes=vmem_limit),
        )

    y_padded = None
    for single_buffer in (True, False):
        try:
            y_padded = jax.block_until_ready(build(single_buffer)(x_c, *flat_params))
            break
        except Exception:
            if not single_buffer:
                raise  # fallback (default double buffering) also failed
    return y_padded[:, :out_dim]


# ------------------------------- module -------------------------------------


class MAPPallas:
    """JAX/Pallas equivalent of the PyTorch MAP module's forward/infer path."""

    def __init__(self, layers, key, compute_dtype=jnp.bfloat16):
        self.params = generate_model_params(layers, key)   # f32 master params
        self.compute_dtype = compute_dtype
        self.losses = []

    def infer(self, x, samples):
        # eval-mode model is deterministic -> all stacked samples identical,
        # matching torch.stack([self.model(input) for _ in range(samples)]).
        y = mlp_forward_pallas(x, self.params, compute_dtype=self.compute_dtype)
        return jnp.broadcast_to(y[None], (samples,) + y.shape)

    def __call__(self, x, samples=1):
        return self.infer(x, samples)

    def all_losses(self):
        return [self.losses]

    # TODO(synk): train_model (optimizer loop / backward) is host-side training
    # logic, not a forward-pass kernel; intentionally not implemented here.


if __name__ == "__main__":
    key = jax.random.PRNGKey(0)
    k_model, k_input = jax.random.split(key)

    layers = [32, 64, 64, 16]          # widths: in=32, two hidden=64, out=16
    batch = 16                         # 2 grid steps of 8 rows -> both v7x TCs
    samples = 3

    model = MAPPallas(layers, k_model)
    x = jax.random.normal(k_input, (batch, layers[0]), dtype=jnp.float32)

    out = model(x, samples=samples)
    out = jax.block_until_ready(out)
    assert out.shape == (samples, batch, layers[-1]), out.shape

    # Reference mirroring the kernel's math (bf16 MXU inputs, f32 accumulate,
    # f32 bias/ReLU). Padding with zeros inside the kernel is exact, so this
    # unpadded reference must match closely.
    h = x.astype(jnp.bfloat16)
    n_layers = len(model.params)
    for i, (w, b) in enumerate(model.params):
        acc = jnp.dot(h, w.astype(jnp.bfloat16),
                      preferred_element_type=jnp.float32) + b
        if i < n_layers - 1:
            h = jnp.maximum(acc, 0.0).astype(jnp.bfloat16)
        else:
            h = acc
    ref = jnp.broadcast_to(h[None], (samples,) + h.shape).astype(out.dtype)
    assert jnp.allclose(out, ref, atol=1e-3, rtol=1e-3), (
        float(jnp.max(jnp.abs(out - ref))))

    print("KERNEL_OK")
</pallas_src>

<mosaic_0001>
module attributes {stable_mosaic.version = 11 : i64} {
  func.func @kernel(%arg0: i32, %arg1: memref<8x32xbf16, #tpu.memory_space<vmem>>, %arg2: memref<32x128xbf16, #tpu.memory_space<vmem>>, %arg3: memref<1x128xf32, #tpu.memory_space<vmem>>, %arg4: memref<128x128xbf16, #tpu.memory_space<vmem>>, %arg5: memref<1x128xf32, #tpu.memory_space<vmem>>, %arg6: memref<128x128xbf16, #tpu.memory_space<vmem>>, %arg7: memref<1x128xf32, #tpu.memory_space<vmem>>, %arg8: memref<8x128xf32, #tpu.memory_space<vmem>>) attributes {dimension_semantics = [#tpu.dimension_semantics<parallel>], iteration_bounds = array<i64: 2>, scalar_prefetch = 0 : i64, scratch_operands = 0 : i64, tpu.core_type = #tpu.core_type<tc>, window_params = [{transform_indices = @transform_0, window_bounds = array<i64: 8, 32>}, {pipeline_mode = #tpu.pipeline_mode<synchronous>, transform_indices = @transform_1, window_bounds = array<i64: 32, 128>}, {pipeline_mode = #tpu.pipeline_mode<synchronous>, transform_indices = @transform_2, window_bounds = array<i64: 1, 128>}, {pipeline_mode = #tpu.pipeline_mode<synchronous>, transform_indices = @transform_3, window_bounds = array<i64: 128, 128>}, {pipeline_mode = #tpu.pipeline_mode<synchronous>, transform_indices = @transform_4, window_bounds = array<i64: 1, 128>}, {pipeline_mode = #tpu.pipeline_mode<synchronous>, transform_indices = @transform_5, window_bounds = array<i64: 128, 128>}, {pipeline_mode = #tpu.pipeline_mode<synchronous>, transform_indices = @transform_6, window_bounds = array<i64: 1, 128>}, {transform_indices = @transform_7, window_bounds = array<i64: 8, 128>}]} {
    %c0 = arith.constant 0 : index
    %c0_0 = arith.constant 0 : index
    %0 = vector.load %arg1[%c0, %c0_0] : memref<8x32xbf16, #tpu.memory_space<vmem>>, vector<8x32xbf16>
    %c0_1 = arith.constant 0 : index
    %c0_2 = arith.constant 0 : index
    %1 = vector.load %arg2[%c0_1, %c0_2] : memref<32x128xbf16, #tpu.memory_space<vmem>>, vector<32x128xbf16>
    %c0_3 = arith.constant 0 : index
    %c0_4 = arith.constant 0 : index
    %2 = vector.load %arg3[%c0_3, %c0_4] : memref<1x128xf32, #tpu.memory_space<vmem>>, vector<1x128xf32>
    %cst = arith.constant dense<0.000000e+00> : vector<8x128xf32>
    %3 = tpu.matmul %0, %1, %cst {dimension_numbers = #tpu.dot_dimension_numbers<[1], [0], [0], [1], [0, 0, 1, 1], [], []>} : vector<8x32xbf16>, vector<32x128xbf16>, vector<8x128xf32> -> vector<8x128xf32>
    %4 = vector.broadcast %2 : vector<1x128xf32> to vector<8x128xf32>
    %5 = arith.addf %3, %4 : vector<8x128xf32>
    %cst_5 = arith.constant 0.000000e+00 : f32
    %6 = vector.broadcast %cst_5 : f32 to vector<8x128xf32>
    %7 = arith.maximumf %5, %6 : vector<8x128xf32>
    %8 = arith.truncf %7 : vector<8x128xf32> to vector<8x128xbf16>
    %c0_6 = arith.constant 0 : index
    %c0_7 = arith.constant 0 : index
    %9 = vector.load %arg4[%c0_6, %c0_7] : memref<128x128xbf16, #tpu.memory_space<vmem>>, vector<128x128xbf16>
    %c0_8 = arith.constant 0 : index
    %c0_9 = arith.constant 0 : index
    %10 = vector.load %arg5[%c0_8, %c0_9] : memref<1x128xf32, #tpu.memory_space<vmem>>, vector<1x128xf32>
    %cst_10 = arith.constant dense<0.000000e+00> : vector<8x128xf32>
    %11 = tpu.matmul %8, %9, %cst_10 {dimension_numbers = #tpu.dot_dimension_numbers<[1], [0], [0], [1], [0, 0, 1, 1], [], []>} : vector<8x128xbf16>, vector<128x128xbf16>, vector<8x128xf32> -> vector<8x128xf32>
    %12 = vector.broadcast %10 : vector<1x128xf32> to vector<8x128xf32>
    %13 = arith.addf %11, %12 : vector<8x128xf32>
    %cst_11 = arith.constant 0.000000e+00 : f32
    %14 = vector.broadcast %cst_11 : f32 to vector<8x128xf32>
    %15 = arith.maximumf %13, %14 : vector<8x128xf32>
    %16 = arith.truncf %15 : vector<8x128xf32> to vector<8x128xbf16>
    %c0_12 = arith.constant 0 : index
    %c0_13 = arith.constant 0 : index
    %17 = vector.load %arg6[%c0_12, %c0_13] : memref<128x128xbf16, #tpu.memory_space<vmem>>, vector<128x128xbf16>
    %c0_14 = arith.constant 0 : index
    %c0_15 = arith.constant 0 : index
    %18 = vector.load %arg7[%c0_14, %c0_15] : memref<1x128xf32, #tpu.memory_space<vmem>>, vector<1x128xf32>
    %cst_16 = arith.constant dense<0.000000e+00> : vector<8x128xf32>
    %19 = tpu.matmul %16, %17, %cst_16 {dimension_numbers = #tpu.dot_dimension_numbers<[1], [0], [0], [1], [0, 0, 1, 1], [], []>} : vector<8x128xbf16>, vector<128x128xbf16>, vector<8x128xf32> -> vector<8x128xf32>
    %20 = vector.broadcast %18 : vector<1x128xf32> to vector<8x128xf32>
    %21 = arith.addf %19, %20 : vector<8x128xf32>
    %c0_17 = arith.constant 0 : index
    %c0_18 = arith.constant 0 : index
    %22 = vector.load %arg8[%c0_17, %c0_18] : memref<8x128xf32, #tpu.memory_space<vmem>>, vector<8x128xf32>
    tpu.vector_store %arg8[%c0_17, %c0_18], %21 {strides = array<i32>} : memref<8x128xf32, #tpu.memory_space<vmem>>, vector<8x128xf32>,
    return
  }
  func.func @transform_0(%arg0: i32) -> (i32, i32) {
    %c0_i32 = arith.constant 0 : i32
    %c0_i32_0 = arith.constant 0 : i32
    return %arg0, %c0_i32 : i32, i32
  }
  func.func @transform_1(%arg0: i32) -> (i32, i32) {
    %c0_i32 = arith.constant 0 : i32
    %c0_i32_0 = arith.constant 0 : i32
    %c0_i32_1 = arith.constant 0 : i32
    return %c0_i32, %c0_i32_0 : i32, i32
  }
  func.func @transform_2(%arg0: i32) -> (i32, i32) {
    %c0_i32 = arith.constant 0 : i32
    %c0_i32_0 = arith.constant 0 : i32
    %c0_i32_1 = arith.constant 0 : i32
    return %c0_i32, %c0_i32_0 : i32, i32
  }
  func.func @transform_3(%arg0: i32) -> (i32, i32) {
    %c0_i32 = arith.constant 0 : i32
    %c0_i32_0 = arith.constant 0 : i32
    %c0_i32_1 = arith.constant 0 : i32
    return %c0_i32, %c0_i32_0 : i32, i32
  }
  func.func @transform_4(%arg0: i32) -> (i32, i32) {
    %c0_i32 = arith.constant 0 : i32
    %c0_i32_0 = arith.constant 0 : i32
    %c0_i32_1 = arith.constant 0 : i32
    return %c0_i32, %c0_i32_0 : i32, i32
  }
  func.func @transform_5(%arg0: i32) -> (i32, i32) {
    %c0_i32 = arith.constant 0 : i32
    %c0_i32_0 = arith.constant 0 : i32
    %c0_i32_1 = arith.constant 0 : i32
    return %c0_i32, %c0_i32_0 : i32, i32
  }
  func.func @transform_6(%arg0: i32) -> (i32, i32) {
    %c0_i32 = arith.constant 0 : i32
    %c0_i32_0 = arith.constant 0 : i32
    %c0_i32_1 = arith.constant 0 : i32
    return %c0_i32, %c0_i32_0 : i32, i32
  }
  func.func @transform_7(%arg0: i32) -> (i32, i32) {
    %c0_i32 = arith.constant 0 : i32
    %c0_i32_0 = arith.constant 0 : i32
    return %arg0, %c0_i32 : i32, i32
  }
}

module attributes {stable_mosaic.version = 11 : i64} {
  func.func @kernel(%arg0: i32, %arg1: memref<8x32xbf16, #tpu.memory_space<vmem>>, %arg2: memref<32x128xbf16, #tpu.memory_space<vmem>>, %arg3: memref<1x128xf32, #tpu.memory_space<vmem>>, %arg4: memref<128x128xbf16, #tpu.memory_space<vmem>>, %arg5: memref<1x128xf32, #tpu.memory_space<vmem>>, %arg6: memref<128x128xbf16, #tpu.memory_space<vmem>>, %arg7: memref<1x128xf32, #tpu.memory_space<vmem>>, %arg8: memref<8x128xf32, #tpu.memory_space<vmem>>) attributes {dimension_semantics = [#tpu.dimension_semantics<parallel>], iteration_bounds = array<i64: 2>, scalar_prefetch = 0 : i64, scratch_operands = 0 : i64, tpu.core_type = #tpu.core_type<tc>, window_params = [{transform_indices = @transform_0, window_bounds = array<i64: 8, 32>}, {pipeline_mode = #tpu.pipeline_mode<synchronous>, transform_indices = @transform_1, window_bounds = array<i64: 32, 128>}, {pipeline_mode = #tpu.pipeline_mode<synchronous>, transform_indices = @transform_2, window_bounds = array<i64: 1, 128>}, {pipeline_mode = #tpu.pipeline_mode<synchronous>, transform_indices = @transform_3, window_bounds = array<i64: 128, 128>}, {pipeline_mode = #tpu.pipeline_mode<synchronous>, transform_indices = @transform_4, window_bounds = array<i64: 1, 128>}, {pipeline_mode = #tpu.pipeline_mode<synchronous>, transform_indices = @transform_5, window_bounds = array<i64: 128, 128>}, {pipeline_mode = #tpu.pipeline_mode<synchronous>, transform_indices = @transform_6, window_bounds = array<i64: 1, 128>}, {transform_indices = @transform_7, window_bounds = array<i64: 8, 128>}]} {
    %c0 = arith.constant 0 : index
    %c0_0 = arith.constant 0 : index
    %0 = vector.load %arg1[%c0, %c0_0] : memref<8x32xbf16, #tpu.memory_space<vmem>>, vector<8x32xbf16>
    %c0_1 = arith.constant 0 : index
    %c0_2 = arith.constant 0 : index
    %1 = vector.load %arg2[%c0_1, %c0_2] : memref<32x128xbf16, #tpu.memory_space<vmem>>, vector<32x128xbf16>
    %c0_3 = arith.constant 0 : index
    %c0_4 = arith.constant 0 : index
    %2 = vector.load %arg3[%c0_3, %c0_4] : memref<1x128xf32, #tpu.memory_space<vmem>>, vector<1x128xf32>
    %cst = arith.constant dense<0.000000e+00> : vector<8x128xf32>
    %3 = tpu.matmul %0, %1, %cst {dimension_numbers = #tpu.dot_dimension_numbers<[1], [0], [0], [1], [0, 0, 1, 1], [], []>} : vector<8x32xbf16>, vector<32x128xbf16>, vector<8x128xf32> -> vector<8x128xf32>
    %4 = vector.broadcast %2 : vector<1x128xf32> to vector<8x128xf32>
    %5 = arith.addf %3, %4 : vector<8x128xf32>
    %cst_5 = arith.constant 0.000000e+00 : f32
    %6 = vector.broadcast %cst_5 : f32 to vector<8x128xf32>
    %7 = arith.maximumf %5, %6 : vector<8x128xf32>
    %8 = arith.truncf %7 : vector<8x128xf32> to vector<8x128xbf16>
    %c0_6 = arith.constant 0 : index
    %c0_7 = arith.constant 0 : index
    %9 = vector.load %arg4[%c0_6, %c0_7] : memref<128x128xbf16, #tpu.memory_space<vmem>>, vector<128x128xbf16>
    %c0_8 = arith.constant 0 : index
    %c0_9 = arith.constant 0 : index
    %10 = vector.load %arg5[%c0_8, %c0_9] : memref<1x128xf32, #tpu.memory_space<vmem>>, vector<1x128xf32>
    %cst_10 = arith.constant dense<0.000000e+00> : vector<8x128xf32>
    %11 = tpu.matmul %8, %9, %cst_10 {dimension_numbers = #tpu.dot_dimension_numbers<[1], [0], [0], [1], [0, 0, 1, 1], [], []>} : vector<8x128xbf16>, vector<128x128xbf16>, vector<8x128xf32> -> vector<8x128xf32>
    %12 = vector.broadcast %10 : vector<1x128xf32> to vector<8x128xf32>
    %13 = arith.addf %11, %12 : vector<8x128xf32>
    %cst_11 = arith.constant 0.000000e+00 : f32
    %14 = vector.broadcast %cst_11 : f32 to vector<8x128xf32>
    %15 = arith.maximumf %13, %14 : vector<8x128xf32>
    %16 = arith.truncf %15 : vector<8x128xf32> to vector<8x128xbf16>
    %c0_12 = arith.constant 0 : index
    %c0_13 = arith.constant 0 : index
    %17 = vector.load %arg6[%c0_12, %c0_13] : memref<128x128xbf16, #tpu.memory_space<vmem>>, vector<128x128xbf16>
    %c0_14 = arith.constant 0 : index
    %c0_15 = arith.constant 0 : index
    %18 = vector.load %arg7[%c0_14, %c0_15] : memref<1x128xf32, #tpu.memory_space<vmem>>, vector<1x128xf32>
    %cst_16 = arith.constant dense<0.000000e+00> : vector<8x128xf32>
    %19 = tpu.matmul %16, %17, %cst_16 {dimension_numbers = #tpu.dot_dimension_numbers<[1], [0], [0], [1], [0, 0, 1, 1], [], []>} : vector<8x128xbf16>, vector<128x128xbf16>, vector<8x128xf32> -> vector<8x128xf32>
    %20 = vector.broadcast %18 : vector<1x128xf32> to vector<8x128xf32>
    %21 = arith.addf %19, %20 : vector<8x128xf32>
    %c0_17 = arith.constant 0 : index
    %c0_18 = arith.constant 0 : index
    %22 = vector.load %arg8[%c0_17, %c0_18] : memref<8x128xf32, #tpu.memory_space<vmem>>, vector<8x128xf32>
    tpu.vector_store %arg8[%c0_17, %c0_18], %21 {strides = array<i32>} : memref<8x128xf32, #tpu.memory_space<vmem>>, vector<8x128xf32>,
    return
  }
  func.func @transform_0(%arg0: i32) -> (i32, i32) {
    %c0_i32 = arith.constant 0 : i32
    %c0_i32_0 = arith.constant 0 : i32
    return %arg0, %c0_i32 : i32, i32
  }
  func.func @transform_1(%arg0: i32) -> (i32, i32) {
    %c0_i32 = arith.constant 0 : i32
    %c0_i32_0 = arith.constant 0 : i32
    %c0_i32_1 = arith.constant 0 : i32
    return %c0_i32, %c0_i32_0 : i32, i32
  }
  func.func @transform_2(%arg0: i32) -> (i32, i32) {
    %c0_i32 = arith.constant 0 : i32
    %c0_i32_0 = arith.constant 0 : i32
    %c0_i32_1 = arith.constant 0 : i32
    return %c0_i32, %c0_i32_0 : i32, i32
  }
  func.func @transform_3(%arg0: i32) -> (i32, i32) {
    %c0_i32 = arith.constant 0 : i32
    %c0_i32_0 = arith.constant 0 : i32
    %c0_i32_1 = arith.constant 0 : i32
    return %c0_i32, %c0_i32_0 : i32, i32
  }
  func.func @transform_4(%arg0: i32) -> (i32, i32) {
    %c0_i32 = arith.constant 0 : i32
    %c0_i32_0 = arith.constant 0 : i32
    %c0_i32_1 = arith.constant 0 : i32
    return %c0_i32, %c0_i32_0 : i32, i32
  }
  func.func @transform_5(%arg0: i32) -> (i32, i32) {
    %c0_i32 = arith.constant 0 : i32
    %c0_i32_0 = arith.constant 0 : i32
    %c0_i32_1 = arith.constant 0 : i32
    return %c0_i32, %c0_i32_0 : i32, i32
  }
  func.func @transform_6(%arg0: i32) -> (i32, i32) {
    %c0_i32 = arith.constant 0 : i32
    %c0_i32_0 = arith.constant 0 : i32
    %c0_i32_1 = arith.constant 0 : i32
    return %c0_i32, %c0_i32_0 : i32, i32
  }
  func.func @transform_7(%arg0: i32) -> (i32, i32) {
    %c0_i32 = arith.constant 0 : i32
    %c0_i32_0 = arith.constant 0 : i32
    return %arg0, %c0_i32 : i32, i32
  }
}

</mosaic_0001>

<bundles_post_ra>
// kernel: tpu_custom_call.1
= control target key start
LH: loop header
LB: loop body
LE: loop exit
PB: predicated region body
PF: predicated region fallthrough
CT: control target
= control target key end

     0   :  { %12 = vsyncpa [#allocation3], 0  ;;  %s1491_s0 = inlined_call_operand.hbm [shape: bf16[16,32], index: 0, kind: input, shape index: {}]   ;;  %s1492_s1 = inlined_call_operand.hbm [shape: bf16[32,128], index: 1, kind: input, shape index: {}]   ;;  %s1493_s2 = inlined_call_operand.vmem [shape: f32[1,128], index: 2, kind: input, shape index: {}]   ;;  %s1494_s3 = inlined_call_operand.hbm [shape: bf16[128,128], index: 3, kind: input, shape index: {}]   ;;  %s1495_s4 = inlined_call_operand.vmem [shape: f32[1,128], index: 4, kind: input, shape index: {}]   ;;  %s1496_s5 = inlined_call_operand.hbm [shape: bf16[128,128], index: 5, kind: input, shape index: {}]   ;;  %s1497_s6 = inlined_call_operand.vmem [shape: f32[1,128], index: 6, kind: input, shape index: {}]   ;;  %s1498_s7 = inlined_call_operand.hbm [shape: f32[16,128], index: 7, kind: output, shape index: {}]  }
   0x1   :  { %14 = vsyncpa [#allocation3 + $0x1], 0 }
   0x2   :  { %15 = vsyncpa [#allocation6], 0 }
   0x3   :  { %16 = vsyncpa [#allocation9], 0 }
   0x4   :  { %17 = vsyncpa [#allocation4], 0 }
   0x5   :  { %19 = vsyncpa [#allocation4 + $0x1], 0  ;;  %s1194_s24 = smov 0   ;;  %s1196_s25 = smov 0  }
   0x6   :  { %s1198_s26 = smov 0   ;;  %s1200_s27 = smov 0  }
   0x7 LB: > { %s1215_s28 = sadd.s32 4294967295, %s1143_s27   ;;  %s747_s29 = sadd.s32 4294967294, %s1143_s27   ;;  %s1143_s27 = sphi %s1200_s27, %s1524_s27   ;;  %s1139_s26 = sphi %s1198_s26, %s1523_s26   ;;  %s1135_s25 = sphi %s1196_s25, %s1522_s25   ;;  %s1131_s24 = sphi %s1194_s24, %s1521_s24  }
   0x8   : > { %p45_p0 = scmp.ne.s32.totalorder %s1135_s25, %s1131_s24  ;;  %p1499_p1 = scmp.eq.s32.totalorder %s1215_s28, 0 }
   0x9   : > { %p201_p3 = scmp.eq.s32.totalorder %s747_s29, 1  ;;  %p748_p5 = scmp.ge.s32.totalorder %s1143_s27, 1 }
   0xa   : > { %p1224_p4 = por %p1499_p1, %p45_p0  ;;  %p208_p7 = scmp.lt.s32.totalorder %s1143_s27, 3 }
   0xb   : > { %p1229_p6 = por %p201_p3, %p45_p0  ;;  %s1145_s10 = smov [#allocation5]  }
   0xc   : > { %s1503_s30 = scalar_select %p1224_p4, 1, 0 }
   0xd   : > { %s1504_s8 = scalar_select %p1229_p6, 1, 0 }
   0xe   : > { %p1234_p8 = pnand %p748_p5, %p208_p7  ;;  %s220_s11 = sshll.u32 %s1145_s10, 4  ;;  %s1238_s11 = int_to_ptr.vmem [resolvable:$true] %s220_s11 }
   0xf   : > { %1505 = sst [smem:[#allocation15_spill]] %s1504_s8  ;;  %s1146_s13 = smov [#allocation7]  }
  0x10   : > { %s1506_s9 = scalar_select %p1234_p8, 1, 0 }
  0x11   : > { %p872_p9 = pneg %p1234_p8  ;;  %s236_s14 = sshll.u32 %s1146_s13, 4  ;;  %s1249_s14 = int_to_ptr.vmem [resolvable:$true] %s236_s14 }
  0x12   : > { %s1147_s15 = smov [#allocation8]   ;;  %s955_s19 = scalar_lea.hbm %s1492_s1, 256 }
  0x13   : > { %p1245_p11 = pnand %p872_p9, %p1499_p1  ;;  %s1251_s16 = sshll.u32 %s1147_s15, 4  ;;  %s253_s16 = int_to_ptr.vmem [resolvable:$true] %s1251_s16 }
  0x14   : > { %p956_p12 = scmp.ne.s32.totalorder %s1492_s1, %s955_s19  ;;  %p962_p5 = scmp.lt.u32.totalorder %s955_s19, %s1492_s1 }
  0x15   : > { %p1261_p13 = pneg %p1245_p11 }
  0x17   : > { %p958_p0 = pnand %p1261_p13, %p956_p12 }
  0x19   : > { %p959_p3 = pneg %p958_p0 }
  0x1b   : > { %p964_p7 = pnand %p962_p5, %p959_p3 }
  0x1d   : > { %967 = shalt.err (!%p964_p7)
}
  0x1e   : > { %s968_s10 = scalar_lea.vmem %s1238_s11, 256  ;;  %p976_p2 = scmp.lt.s32.totalorder %s1238_s11, %s1238_s11 }
  0x1f   : > { %p969_p9 = scmp.ne.s32.totalorder %s1238_s11, %s968_s10  ;;  %p977_p6 = scmp.lt.s32.totalorder %s968_s10, %s968_s10 }
  0x21   : > { %p971_p10 = pnand %p969_p9, %p1261_p13  ;;  %p978_p12 = por %p977_p6, %p976_p2 }
  0x23   : > { %p972_p1 = pneg %p971_p10 }
  0x25   : > { %p979_p0 = pnand %p978_p12, %p972_p1 }
  0x27   : > { %982 = shalt.err (!%p979_p0)
}
  0x28   : > { %s1148_s13 = smov 64   ;;  %s1149_s15 = smov 4  }
  0x29   : > { %875 = dma.hbm_to_vmem [thread:$0]  (!%p1245_p11), %s1492_s1, 256, %s1238_s11, [#allocation6], %s1148_s13, %s1148_s13, %s1149_s15  }
  0x2a   : > { %s983_s21 = scalar_lea.hbm %s1494_s3, 1024 }
  0x2b   : > { %p984_p1 = scmp.ne.s32.totalorder %s1494_s3, %s983_s21  ;;  %p990_p10 = scmp.lt.u32.totalorder %s983_s21, %s1494_s3 }
  0x2d   : > { %p986_p2 = pnand %p984_p1, %p1261_p13 }
  0x2f   : > { %p987_p6 = pneg %p986_p2 }
  0x31   : > { %p992_p3 = pnand %p990_p10, %p987_p6 }
  0x33   : > { %995 = shalt.err (!%p992_p3)
}
  0x34   : > { %s996_s11 = scalar_lea.vmem %s1249_s14, 1024  ;;  %p1004_p12 = scmp.lt.s32.totalorder %s1249_s14, %s1249_s14 }
  0x35   : > { %p997_p5 = scmp.ne.s32.totalorder %s1249_s14, %s996_s11  ;;  %p1005_p0 = scmp.lt.s32.totalorder %s996_s11, %s996_s11 }
  0x37   : > { %p999_p7 = pnand %p997_p5, %p1261_p13  ;;  %p1006_p1 = por %p1005_p0, %p1004_p12 }
  0x39   : > { %p1000_p9 = pneg %p999_p7 }
  0x3b   : > { %p1007_p2 = pnand %p1006_p1, %p1000_p9 }
  0x3d   : > { %1010 = shalt.err (!%p1007_p2)
}
  0x3e   : > { %878 = dma.hbm_to_vmem [thread:$0]  (!%p1245_p11), %s1494_s3, 1024, %s1249_s14, [#allocation6], %s1148_s13, %s1148_s13, %s1149_s15  }
  0x3f   : > { %s1011_s20 = scalar_lea.hbm %s1496_s5, 1024 }
  0x40   : > { %p1012_p6 = scmp.ne.s32.totalorder %s1496_s5, %s1011_s20  ;;  %p1018_p5 = scmp.lt.u32.totalorder %s1011_s20, %s1496_s5 }
  0x42   : > { %p1014_p10 = pnand %p1012_p6, %p1261_p13 }
  0x44   : > { %p1015_p3 = pneg %p1014_p10 }
  0x46   : > { %p1020_p7 = pnand %p1018_p5, %p1015_p3 }
  0x48   : > { %1023 = shalt.err (!%p1020_p7)
}
  0x49   : > { %s1024_s11 = scalar_lea.vmem %s253_s16, 1024  ;;  %p1032_p1 = scmp.lt.s32.totalorder %s253_s16, %s253_s16 }
  0x4a   : > { %p1025_p9 = scmp.ne.s32.totalorder %s253_s16, %s1024_s11  ;;  %p1033_p2 = scmp.lt.s32.totalorder %s1024_s11, %s1024_s11 }
  0x4c   : > { %p1027_p12 = pnand %p1025_p9, %p1261_p13  ;;  %p1034_p4 = por %p1033_p2, %p1032_p1 }
  0x4e   : > { %p1028_p0 = pneg %p1027_p12 }
  0x50   : > { %p1035_p8 = pnand %p1034_p4, %p1028_p0 }
  0x52   : > { %1038 = shalt.err (!%p1035_p8)
}
  0x53   : > { %881 = dma.hbm_to_vmem [thread:$0]  (!%p1245_p11), %s1496_s5, 1024, %s253_s16, [#allocation9], %s1148_s13, %s1148_s13, %s1149_s15  }
  0x54   : > { %s1334_s22 = sadd.s32 1, %s1143_s27   ;;  %s32_s17 = sadd.s32 1, %s1139_s26 }
  0x55   : > { %s29_s12 = ssub.s32 %s1143_s27, %s1334_s22  ;;  %p39_p8 = scmp.ne.s32.totalorder %s1139_s26, %s1135_s25 }
  0x56   : > { %p30_p4 = scmp.eq.s32.totalorder %s29_s12, 0  ;;  %p40_p13 = scmp.eq.s32.totalorder %s1143_s27, 0 }
  0x57   : > { %p893_p6 = scmp.lt.s32.totalorder %s1143_s27, 2  ;;  %p1509_p3 = scmp.eq.s32.totalorder %s1215_s28, 1 }
  0x58   : > { %s1344_s18 = scalar_select %p30_p4, %s1139_s26, %s32_s17  }
  0x59   : > { %p41_p10 = por %p40_p13, %p39_p8  ;;  %p1348_p5 = por %p1509_p3, %p39_p8 }
  0x5a   : > { %s269_s20 = sand.u32 1, %s1139_s26   ;;  %s754_s21 = sshll.u32 %s1143_s27, 6 }
  0x5b   : > { %s753_s16 = sshll.u32 %s269_s20, 2  ;;  %s1357_s23 = scalar_lea.hbm %s1491_s0, %s754_s21 }
  0x5c   : > { %s273_s29 = scalar_lea.vmem [#allocation2], %s753_s16  ;;  %p1359_p11 = pnand %p893_p6, %p41_p10 }
  0x5d   : > { %s280_s10 = sshll.u32 %s273_s29, 4  ;;  %s270_s14 = scalar_lea.sflag [#allocation3], %s269_s20  ;;  %s1363_s10 = int_to_ptr.vmem [resolvable:$true] %s280_s10 }
  0x5e   : > { %s1039_s8 = scalar_lea.hbm %s1357_s23, 64  ;;  %p1041_p9 = pneg %p1359_p11 }
  0x5f   : > { %p1040_p7 = scmp.ne.s32.totalorder %s1357_s23, %s1039_s8  ;;  %s1044_s21 = scalar_lea.hbm %s1491_s0, 128 }
  0x60   : > { %p1045_p1 = scmp.lt.u32.totalorder %s1357_s23, %s1491_s0  ;;  %p1046_p2 = scmp.lt.u32.totalorder %s1044_s21, %s1039_s8 }
  0x61   : > { %p1042_p12 = pnand %p1041_p9, %p1040_p7  ;;  %p1048_p8 = scmp.lt.u32.totalorder %s1039_s8, %s1357_s23 }
  0x62   : > { %p1047_p4 = por %p1046_p2, %p1045_p1 }
  0x63   : > { %p1043_p0 = pneg %p1042_p12 }
  0x64   : > { %p1049_p13 = por %p1048_p8, %p1047_p4 }
  0x66   : > { %p1050_p6 = pnand %p1049_p13, %p1043_p0 }
  0x68   : > { %1053 = shalt.err (!%p1050_p6)
}
  0x69   : > { %s1054_s20 = scalar_lea.vmem %s1363_s10, 64  ;;  %s1150_s15 = smov [#allocation2]  }
  0x6a   : > { %p1055_p10 = scmp.ne.s32.totalorder %s1363_s10, %s1054_s20  ;;  %s1059_s29 = sshll.u32 %s1150_s15, 4  ;;  %s1060_s29 = int_to_ptr.vmem [resolvable:$false] %s1059_s29 }
  0x6b   : > { %s1061_s12 = scalar_lea.vmem %s1060_s29, 128  ;;  %p1062_p12 = scmp.lt.s32.totalorder %s1363_s10, %s1060_s29 }
  0x6c   : > { %p1057_p3 = pnand %p1055_p10, %p1041_p9  ;;  %p1063_p1 = scmp.lt.s32.totalorder %s1061_s12, %s1054_s20 }
  0x6e   : > { %p1058_p7 = pneg %p1057_p3  ;;  %p1064_p2 = por %p1063_p1, %p1062_p12 }
  0x70   : > { %p1065_p4 = pnand %p1064_p2, %p1058_p7 }
  0x72   : > { %1068 = shalt.err (!%p1065_p4)
}
  0x73   : > { %885 = dma.hbm_to_vmem [thread:$0]  (!%p1359_p11), %s1357_s23, 64, %s1363_s10, %s270_s14  }
  0x74   : > { %p1512_p0 = scmp.ne.s32.totalorder %s1506_s9, 0 }
  0x75   : > { %s1393_s8 = sand.u32 (!%p1512_p0), 1, %s1135_s25   ;;  %p1513_p9 = scmp.ne.s32.totalorder (!%p1512_p0), %s1503_s30, 0 }
  0x76   : > { %289 = sbr.rel (%p1512_p0) target bundleno = 806 (0x326), region = 48  ;;  %s756_s17 = sshll.u32 (!%p1512_p0), %s1393_s8, 2 }
  0x77   : > { %s292_s21 = scalar_lea.sflag (!%p1512_p0), [#allocation3], %s1393_s8  ;;  %s295_s16 = scalar_lea.vmem (!%p1512_p0), [#allocation2], %s756_s17 }
  0x7d   : > { %1114 = dma.done.wait (%p1513_p9), %s292_s21, 64  }
  0x7e   : > { %1116 = vsyncadd (%p1513_p9), %s292_s21, 4294967232  ;;  %p1514_p8 = scmp.eq.s32.totalorder %s1215_s28, 0 }
  0x80   : > { %1118 = dma.done.wait (%p1514_p8), [#allocation6], 1280   ;;  %p1515_p11 = pmov %p1514_p8 }
  0x81   : > { %p1516_p13 = pmov %p1514_p8 }
  0x82   : > { %1120 = vsyncadd (%p1515_p11), [#allocation6], 4294966016 }
  0x83   : > { %1122 = dma.done.wait (%p1516_p13), [#allocation9], 1024   ;;  %p1517_p6 = pmov %p1514_p8 }
  0x84   : > { %v1151_v0 = vmov 0.0   ;;  %vm1152_vm0 = vmmov 0   ;;  %v937_v1 = vld [vmem:[#allocation5] sm:$0xff]   ;;  %v938_v2 = vld [vmem:[#allocation5 + $0x8] sm:$0xff]   ;;  %v939_v3 = vld [vmem:[#allocation7] sm:$0xff]   ;;  %vm363_vm1 = vcmask 261120  }
  0x85   : > { %1124 = vsyncadd (%p1517_p6), [#allocation9], 4294966272  ;;  %808 = vmatprep.subr.bf16.mxu0 %v1151_v0  ;;  %812 = vmatprep.mubr.msk.bf16.mxu0 %vm1152_vm0, %v1151_v0  ;;  %v940_v4 = vld [vmem:[#allocation7 + $0x8] sm:$0xff]   ;;  %v941_v6 = vld [vmem:[#allocation7 + $0x10] sm:$0xff]   ;;  %s760_s11 = sshll.u32 %s1393_s8, 3  ;;  %s784_s20 = sshll.u32 %s1215_s28, 7 }
  0x86   : > { %816 = vmatprep.subr.bf16.mxu1 %v1151_v0  ;;  %832 = vmatprep.mubr.msk.bf16.mxu1 %vm1152_vm0, %v1151_v0  ;;  %v339_v5 = vld [vmem:[%s295_s16] sm:$0xf]  ;;  %v942_v7 = vld [vmem:[#allocation7 + $0x18] sm:$0xff]   ;;  %v943_v8 = vld [vmem:[#allocation7 + $0x20] sm:$0xff]   ;;  %s337_s15 = scalar_lea.vmem [#allocation10], %s760_s11  ;;  %s1447_s21 = scalar_lea.hbm %s1498_s7, %s784_s20 }
  0x87   : > { %809 = vmatpush3.bf16.msra.mxu0 %v937_v1  ;;  %817 = vmatpush3.bf16.msra.mxu1 %v939_v3  ;;  %v944_v9 = vld [vmem:[#allocation7 + $0x28] sm:$0xff]   ;;  %v945_v10 = vld [vmem:[#allocation7 + $0x30] sm:$0xff]   ;;  %v946_v11 = vld [vmem:[#allocation7 + $0x38] sm:$0xff]   ;;  %s648_s29 = sshll.u32 %s337_s15, 4  ;;  %s635_s16 = scalar_lea.sflag [#allocation4], %s1393_s8  ;;  %s1449_s29 = int_to_ptr.vmem [resolvable:$true] %s648_s29 }
  0x88   : > { %810 = vmatprep.subr.bf16.mxu0 %v1151_v0  ;;  %818 = vmatprep.subr.bf16.mxu1 %v1151_v0  ;;  %v947_v12 = vld [vmem:[#allocation8] sm:$0xff]   ;;  %v948_v13 = vld [vmem:[#allocation8 + $0x8] sm:$0xff]   ;;  %v949_v14 = vld [vmem:[#allocation8 + $0x10] sm:$0xff]   ;;  %s1069_s28 = scalar_lea.vmem %s1449_s29, 128  ;;  %s1153_s30 = smov [#allocation10]  }
  0x89   : > { %v950_v15 = vld [vmem:[#allocation8 + $0x18] sm:$0xff]   ;;  %v951_v16 = vld [vmem:[#allocation8 + $0x20] sm:$0xff]   ;;  %v952_v17 = vld [vmem:[#allocation8 + $0x28] sm:$0xff]   ;;  %p1070_p10 = scmp.ne.s32.totalorder %s1449_s29, %s1069_s28  ;;  %s1073_s9 = sshll.u32 %s1153_s30, 4  ;;  %s1074_s9 = int_to_ptr.vmem [resolvable:$false] %s1073_s9 }
  0x8a   : > { %v761_v18 = vld [vmem:[%s1493_s2] ss:$0 sm:$0xff]  ;;  %v953_v26 = vld [vmem:[#allocation8 + $0x30] sm:$0xff]   ;;  %v954_v27 = vld [vmem:[#allocation8 + $0x38] sm:$0xff]   ;;  %s1075_s23 = scalar_lea.vmem %s1074_s9, 256  ;;  %p1076_p12 = scmp.lt.s32.totalorder %s1449_s29, %s1074_s9 }
  0x8b   : > { %811 = vmatpush3.bf16.msra.mxu0 %v938_v2  ;;  %819 = vmatpush3.bf16.msra.mxu1 %v940_v4  ;;  %v765_v28 = vld [vmem:[%s1495_s4] ss:$0 sm:$0xff]  ;;  %p1071_p3 = pnand %p1070_p10, %p1348_p5  ;;  %p1077_p1 = scmp.lt.s32.totalorder %s1075_s23, %s1069_s28 }
  0x8c   : > { %836 = vmatprep.subr.bf16.mxu0 %v1151_v0  ;;  %820 = vmatprep.subr.bf16.mxu1 %v1151_v0  ;;  %v774_v36 = vld [vmem:[%s1497_s6] ss:$0 sm:$0xff] }
  0x8d   : > { %p1072_p7 = pneg %p1071_p3  ;;  %p1078_p2 = por %p1077_p1, %p1076_p12 }
  0x8e   : > { %813 = vmatmul.mubr.msk.bf16.vlgmr.msra.gmra.mrb[0].mxu0 %vm363_vm1, %v339_v5 }
  0x8f   : > { %852 = vmatprep.mubr.msk.bf16.mxu0 %vm1152_vm0, %v1151_v0  ;;  %821 = vmatpush3.bf16.msra.mxu1 %v941_v6  ;;  %p1079_p4 = pnand %p1078_p2, %p1072_p7 }
  0x90   : > { %822 = vmatprep.subr.bf16.mxu1 %v1151_v0  ;;  %837 = vmatpush3.bf16.msra.mxu0 %v947_v12 }
  0x91   : > { %838 = vmatprep.subr.bf16.mxu0 %v1151_v0 }
  0x93   : > { %823 = vmatpush3.bf16.msra.mxu1 %v942_v7 }
  0x94   : > { %824 = vmatprep.subr.bf16.mxu1 %v1151_v0  ;;  %839 = vmatpush3.bf16.msra.mxu0 %v948_v13 }
  0x95   : > { %840 = vmatprep.subr.bf16.mxu0 %v1151_v0 }
  0x97   : > { %825 = vmatpush3.bf16.msra.mxu1 %v943_v8 }
  0x98   : > { %826 = vmatprep.subr.bf16.mxu1 %v1151_v0  ;;  %841 = vmatpush3.bf16.msra.mxu0 %v949_v14 }
  0x99   : > { %842 = vmatprep.subr.bf16.mxu0 %v1151_v0 }
  0x9b   : > { %827 = vmatpush3.bf16.msra.mxu1 %v944_v9 }
  0x9c   : > { %828 = vmatprep.subr.bf16.mxu1 %v1151_v0  ;;  %843 = vmatpush3.bf16.msra.mxu0 %v950_v15 }
  0x9d   : > { %844 = vmatprep.subr.bf16.mxu0 %v1151_v0 }
  0x9f   : > { %829 = vmatpush3.bf16.msra.mxu1 %v945_v10 }
  0xa0   : > { %830 = vmatprep.subr.bf16.mxu1 %v1151_v0  ;;  %845 = vmatpush3.bf16.msra.mxu0 %v951_v16 }
  0xa1   : > { %846 = vmatprep.subr.bf16.mxu0 %v1151_v0 }
  0xa3   : > { %831 = vmatpush3.bf16.msra.mxu1 %v946_v11 }
  0xa4   : > { %847 = vmatpush3.bf16.msra.mxu0 %v952_v17 }
  0xa5   : > { %848 = vmatprep.subr.bf16.mxu0 %v1151_v0 }
  0xa8   : > { %849 = vmatpush3.bf16.msra.mxu0 %v953_v26 }
  0xa9   : > { %850 = vmatprep.subr.bf16.mxu0 %v1151_v0 }
  0xac   : > { %851 = vmatpush3.bf16.msra.mxu0 %v954_v27 }
 0x161   : > { %v401_v19 = vpop.f32.mrb[0].mxu0 }
 0x162   : > { %v402_v20 = vadd.f32 %v761_v18, %v401_v19  ;;  %v814_v21 = vpop.f32.mrb[1].mxu0 }
 0x163   : > { %v404_v22 = vpop.f32.mrb[2].mxu0 }
 0x164   : > { %v407_v23 = vmax.f32 %v402_v20, 0.0  ;;  %v815_v24 = vpop.f32.mrb[3].mxu0 }
 0x166   : > { %v408_v25 = vpack.c.bf16 %v407_v23, %v407_v23 }
 0x168   : > { %833 = vmatmul.mubr.bf16.vlgmr.msra.gmra.mrb[0].mxu1 %v408_v25 }
 0x23b   : > { %v514_v29 = vpop.f32.mrb[0].mxu1 }
 0x23c   : > { %v515_v30 = vadd.f32 %v765_v28, %v514_v29  ;;  %v834_v31 = vpop.f32.mrb[1].mxu1 }
 0x23d   : > { %v517_v32 = vpop.f32.mrb[2].mxu1 }
 0x23e   : > { %v520_v33 = vmax.f32 %v515_v30, 0.0  ;;  %v835_v34 = vpop.f32.mrb[3].mxu1 }
 0x240   : > { %v521_v35 = vpack.c.bf16 %v520_v33, %v520_v33 }
 0x242   : > { %853 = vmatmul.mubr.bf16.vlgmr.msra.gmra.mrb[4].mxu0 %v521_v35 }
 0x315   : > { %v627_v37 = vpop.f32.mrb[4].mxu0 }
 0x316   : > { %v628_v38 = vadd.f32 %v774_v36, %v627_v37  ;;  %v854_v39 = vpop.f32.mrb[5].mxu0 }
 0x317   : > { %v630_v40 = vpop.f32.mrb[6].mxu0 }
 0x318   : > { %633 = vst [vmem:[%s337_s15] sm:$0xff] %v628_v38  ;;  %v855_v41 = vpop.f32.mrb[7].mxu0 }
 0x319   : > { %1082 = shalt.err (!%p1079_p4)
}
 0x31a   : > { %s1083_s8 = scalar_lea.hbm %s1447_s21, 128  ;;  %s1087_s14 = scalar_lea.hbm %s1498_s7, 256 }
 0x31b   : > { %p1084_p0 = scmp.ne.s32.totalorder %s1447_s21, %s1083_s8  ;;  %p1088_p11 = scmp.lt.u32.totalorder %s1447_s21, %s1498_s7 }
 0x31c   : > { %p1089_p13 = scmp.lt.u32.totalorder %s1087_s14, %s1083_s8  ;;  %p1091_p10 = scmp.lt.u32.totalorder %s1083_s8, %s1447_s21 }
 0x31d   : > { %p1085_p9 = pnand %p1084_p0, %p1348_p5 }
 0x31e   : > { %p1090_p6 = por %p1089_p13, %p1088_p11 }
 0x31f   : > { %p1086_p8 = pneg %p1085_p9 }
 0x320   : > { %p1092_p3 = por %p1091_p10, %p1090_p6 }
 0x322   : > { %p1093_p7 = pnand %p1092_p3, %p1086_p8 }
 0x324   : > { %1096 = shalt.err (!%p1093_p7)
}
 0x325   : > { %870 = dma.vmem_to_hbm [thread:$0]  (%p1348_p5), %s1449_s29, 128, %s1447_s21, %s635_s16  }
 0x326 PF: > { %s1518_s15 = sld [smem:[#allocation15_spill]]  ;;  %s660_s12 = sand.u32 1, %s1131_s24  }
 0x327   : > { %p1520_p1 = scmp.ge.s32.totalorder %s1143_s27, 2  ;;  %s661_s17 = scalar_lea.sflag [#allocation4], %s660_s12 }
 0x32c   : > { %p1519_p12 = scmp.ne.s32.totalorder %s1518_s15, 0 }
 0x32e   : > { %p887_p2 = pnand %p1520_p1, %p1519_p12 }
 0x330   : > { %1126 = dma.done.wait (!%p887_p2), %s661_s17, 128  }
 0x331   : > { %1128 = vsyncadd (!%p887_p2), %s661_s17, 4294967168  ;;  %p22_p4 = scmp.ge.s32.totalorder %s1334_s22, 4   ;;  %s1521_s24 = smov %s1135_s25 }
 0x332   : > { %s1522_s25 = smov %s1139_s26  ;;  %s1523_s26 = smov %s1344_s18 }
 0x333   : > { %s1524_s27 = smov %s1334_s22  ;;  %24 = sbr.rel (!%p22_p4) target bundleno = 7 (0x7), region = 105 }
 0x33a   :  { %666 = vsyncpa [#allocation3], 1 }
 0x33b   :  { %668 = vsyncpa [#allocation3 + $0x1], 1 }
 0x33c   :  { %669 = vsyncpa [#allocation6], 1 }
 0x33d   :  { %670 = vsyncpa [#allocation9], 1 }
 0x33e   :  { %671 = vsyncpa [#allocation4], 1 }
 0x33f   :  { %673 = vsyncpa [#allocation4 + $0x1], 1 }

// kernel: tpu_custom_call.1
= control target key start
LH: loop header
LB: loop body
LE: loop exit
PB: predicated region body
PF: predicated region fallthrough
CT: control target
= control target key end

     0   :  { %12 = vsyncpa [#allocation3], 0  ;;  %s1491_s0 = inlined_call_operand.hbm [shape: bf16[16,32], index: 0, kind: input, shape index: {}]   ;;  %s1492_s1 = inlined_call_operand.hbm [shape: bf16[32,128], index: 1, kind: input, shape index: {}]   ;;  %s1493_s2 = inlined_call_operand.vmem [shape: f32[1,128], index: 2, kind: input, shape index: {}]   ;;  %s1494_s3 = inlined_call_operand.hbm [shape: bf16[128,128], index: 3, kind: input, shape index: {}]   ;;  %s1495_s4 = inlined_call_operand.vmem [shape: f32[1,128], index: 4, kind: input, shape index: {}]   ;;  %s1496_s5 = inlined_call_operand.hbm [shape: bf16[128,128], index: 5, kind: input, shape index: {}]   ;;  %s1497_s6 = inlined_call_operand.vmem [shape: f32[1,128], index: 6, kind: input, shape index: {}]   ;;  %s1498_s7 = inlined_call_operand.hbm [shape: f32[16,128], index: 7, kind: output, shape index: {}]  }
   0x1   :  { %14 = vsyncpa [#allocation3 + $0x1], 0 }
   0x2   :  { %15 = vsyncpa [#allocation6], 0 }
   0x3   :  { %16 = vsyncpa [#allocation9], 0 }
   0x4   :  { %17 = vsyncpa [#allocation4], 0 }
   0x5   :  { %19 = vsyncpa [#allocation4 + $0x1], 0  ;;  %s1194_s24 = smov 0   ;;  %s1196_s25 = smov 0  }
   0x6   :  { %s1198_s26 = smov 0   ;;  %s1200_s27 = smov 0  }
   0x7 LB: > { %s1215_s28 = sadd.s32 4294967295, %s1143_s27   ;;  %s747_s29 = sadd.s32 4294967294, %s1143_s27   ;;  %s1143_s27 = sphi %s1200_s27, %s1524_s27   ;;  %s1139_s26 = sphi %s1198_s26, %s1523_s26   ;;  %s1135_s25 = sphi %s1196_s25, %s1522_s25   ;;  %s1131_s24 = sphi %s1194_s24, %s1521_s24  }
   0x8   : > { %p45_p0 = scmp.ne.s32.totalorder %s1135_s25, %s1131_s24  ;;  %p1499_p1 = scmp.eq.s32.totalorder %s1215_s28, 0 }
   0x9   : > { %p201_p3 = scmp.eq.s32.totalorder %s747_s29, 1  ;;  %p748_p5 = scmp.ge.s32.totalorder %s1143_s27, 1 }
   0xa   : > { %p1224_p4 = por %p1499_p1, %p45_p0  ;;  %p208_p7 = scmp.lt.s32.totalorder %s1143_s27, 3 }
   0xb   : > { %p1229_p6 = por %p201_p3, %p45_p0  ;;  %s1145_s10 = smov [#allocation5]  }
   0xc   : > { %s1503_s30 = scalar_select %p1224_p4, 1, 0 }
   0xd   : > { %s1504_s8 = scalar_select %p1229_p6, 1, 0 }
   0xe   : > { %p1234_p8 = pnand %p748_p5, %p208_p7  ;;  %s220_s11 = sshll.u32 %s1145_s10, 4  ;;  %s1238_s11 = int_to_ptr.vmem [resolvable:$true] %s220_s11 }
   0xf   : > { %1505 = sst [smem:[#allocation15_spill]] %s1504_s8  ;;  %s1146_s13 = smov [#allocation7]  }
  0x10   : > { %s1506_s9 = scalar_select %p1234_p8, 1, 0 }
  0x11   : > { %p872_p9 = pneg %p1234_p8  ;;  %s236_s14 = sshll.u32 %s1146_s13, 4  ;;  %s1249_s14 = int_to_ptr.vmem [resolvable:$true] %s236_s14 }
  0x12   : > { %s1147_s15 = smov [#allocation8]   ;;  %s955_s19 = scalar_lea.hbm %s1492_s1, 256 }
  0x13   : > { %p1245_p11 = pnand %p872_p9, %p1499_p1  ;;  %s1251_s16 = sshll.u32 %s1147_s15, 4  ;;  %s253_s16 = int_to_ptr.vmem [resolvable:$true] %s1251_s16 }
  0x14   : > { %p956_p12 = scmp.ne.s32.totalorder %s1492_s1, %s955_s19  ;;  %p962_p5 = scmp.lt.u32.totalorder %s955_s19, %s1492_s1 }
  0x15   : > { %p1261_p13 = pneg %p1245_p11 }
  0x17   : > { %p958_p0 = pnand %p1261_p13, %p956_p12 }
  0x19   : > { %p959_p3 = pneg %p958_p0 }
  0x1b   : > { %p964_p7 = pnand %p962_p5, %p959_p3 }
  0x1d   : > { %967 = shalt.err (!%p964_p7)
}
  0x1e   : > { %s968_s10 = scalar_lea.vmem %s1238_s11, 256  ;;  %p976_p2 = scmp.lt.s32.totalorder %s1238_s11, %s1238_s11 }
  0x1f   : > { %p969_p9 = scmp.ne.s32.totalorder %s1238_s11, %s968_s10  ;;  %p977_p6 = scmp.lt.s32.totalorder %s968_s10, %s968_s10 }
  0x21   : > { %p971_p10 = pnand %p969_p9, %p1261_p13  ;;  %p978_p12 = por %p977_p6, %p976_p2 }
  0x23   : > { %p972_p1 = pneg %p971_p10 }
  0x25   : > { %p979_p0 = pnand %p978_p12, %p972_p1 }
  0x27   : > { %982 = shalt.err (!%p979_p0)
}
  0x28   : > { %s1148_s13 = smov 64   ;;  %s1149_s15 = smov 4  }
  0x29   : > { %875 = dma.hbm_to_vmem [thread:$0]  (!%p1245_p11), %s1492_s1, 256, %s1238_s11, [#allocation6], %s1148_s13, %s1148_s13, %s1149_s15  }
  0x2a   : > { %s983_s21 = scalar_lea.hbm %s1494_s3, 1024 }
  0x2b   : > { %p984_p1 = scmp.ne.s32.totalorder %s1494_s3, %s983_s21  ;;  %p990_p10 = scmp.lt.u32.totalorder %s983_s21, %s1494_s3 }
  0x2d   : > { %p986_p2 = pnand %p984_p1, %p1261_p13 }
  0x2f   : > { %p987_p6 = pneg %p986_p2 }
  0x31   : > { %p992_p3 = pnand %p990_p10, %p987_p6 }
  0x33   : > { %995 = shalt.err (!%p992_p3)
}
  0x34   : > { %s996_s11 = scalar_lea.vmem %s1249_s14, 1024  ;;  %p1004_p12 = scmp.lt.s32.totalorder %s1249_s14, %s1249_s14 }
  0x35   : > { %p997_p5 = scmp.ne.s32.totalorder %s1249_s14, %s996_s11  ;;  %p1005_p0 = scmp.lt.s32.totalorder %s996_s11, %s996_s11 }
  0x37   : > { %p999_p7 = pnand %p997_p5, %p1261_p13  ;;  %p1006_p1 = por %p1005_p0, %p1004_p12 }
  0x39   : > { %p1000_p9 = pneg %p999_p7 }
  0x3b   : > { %p1007_p2 = pnand %p1006_p1, %p1000_p9 }
  0x3d   : > { %1010 = shalt.err (!%p1007_p2)
}
  0x3e   : > { %878 = dma.hbm_to_vmem [thread:$0]  (!%p1245_p11), %s1494_s3, 1024, %s1249_s14, [#allocation6], %s1148_s13, %s1148_s13, %s1149_s15  }
  0x3f   : > { %s1011_s20 = scalar_lea.hbm %s1496_s5, 1024 }
  0x40   : > { %p1012_p6 = scmp.ne.s32.totalorder %s1496_s5, %s1011_s20  ;;  %p1018_p5 = scmp.lt.u32.totalorder %s1011_s20, %s1496_s5 }
  0x42   : > { %p1014_p10 = pnand %p1012_p6, %p1261_p13 }
  0x44   : > { %p1015_p3 = pneg %p1014_p10 }
  0x46   : > { %p1020_p7 = pnand %p1018_p5, %p1015_p3 }
  0x48   : > { %1023 = shalt.err (!%p1020_p7)
}
  0x49   : > { %s1024_s11 = scalar_lea.vmem %s253_s16, 1024  ;;  %p1032_p1 = scmp.lt.s32.totalorder %s253_s16, %s253_s16 }
  0x4a   : > { %p1025_p9 = scmp.ne.s32.totalorder %s253_s16, %s1024_s11  ;;  %p1033_p2 = scmp.lt.s32.totalorder %s1024_s11, %s1024_s11 }
  0x4c   : > { %p1027_p12 = pnand %p1025_p9, %p1261_p13  ;;  %p1034_p4 = por %p1033_p2, %p1032_p1 }
  0x4e   : > { %p1028_p0 = pneg %p1027_p12 }
  0x50   : > { %p1035_p8 = pnand %p1034_p4, %p1028_p0 }
  0x52   : > { %1038 = shalt.err (!%p1035_p8)
}
  0x53   : > { %881 = dma.hbm_to_vmem [thread:$0]  (!%p1245_p11), %s1496_s5, 1024, %s253_s16, [#allocation9], %s1148_s13, %s1148_s13, %s1149_s15  }
  0x54   : > { %s1334_s22 = sadd.s32 1, %s1143_s27   ;;  %s32_s17 = sadd.s32 1, %s1139_s26 }
  0x55   : > { %s29_s12 = ssub.s32 %s1143_s27, %s1334_s22  ;;  %p39_p8 = scmp.ne.s32.totalorder %s1139_s26, %s1135_s25 }
  0x56   : > { %p30_p4 = scmp.eq.s32.totalorder %s29_s12, 0  ;;  %p40_p13 = scmp.eq.s32.totalorder %s1143_s27, 0 }
  0x57   : > { %p893_p6 = scmp.lt.s32.totalorder %s1143_s27, 2  ;;  %p1509_p3 = scmp.eq.s32.totalorder %s1215_s28, 1 }
  0x58   : > { %s1344_s18 = scalar_select %p30_p4, %s1139_s26, %s32_s17  }
  0x59   : > { %p41_p10 = por %p40_p13, %p39_p8  ;;  %p1348_p5 = por %p1509_p3, %p39_p8 }
  0x5a   : > { %s269_s20 = sand.u32 1, %s1139_s26   ;;  %s754_s21 = sshll.u32 %s1143_s27, 6 }
  0x5b   : > { %s753_s16 = sshll.u32 %s269_s20, 2  ;;  %s1357_s23 = scalar_lea.hbm %s1491_s0, %s754_s21 }
  0x5c   : > { %s273_s29 = scalar_lea.vmem [#allocation2], %s753_s16  ;;  %p1359_p11 = pnand %p893_p6, %p41_p10 }
  0x5d   : > { %s280_s10 = sshll.u32 %s273_s29, 4  ;;  %s270_s14 = scalar_lea.sflag [#allocation3], %s269_s20  ;;  %s1363_s10 = int_to_ptr.vmem [resolvable:$true] %s280_s10 }
  0x5e   : > { %s1039_s8 = scalar_lea.hbm %s1357_s23, 64  ;;  %p1041_p9 = pneg %p1359_p11 }
  0x5f   : > { %p1040_p7 = scmp.ne.s32.totalorder %s1357_s23, %s1039_s8  ;;  %s1044_s21 = scalar_lea.hbm %s1491_s0, 128 }
  0x60   : > { %p1045_p1 = scmp.lt.u32.totalorder %s1357_s23, %s1491_s0  ;;  %p1046_p2 = scmp.lt.u32.totalorder %s1044_s21, %s1039_s8 }
  0x61   : > { %p1042_p12 = pnand %p1041_p9, %p1040_p7  ;;  %p1048_p8 = scmp.lt.u32.totalorder %s1039_s8, %s1357_s23 }
  0x62   : > { %p1047_p4 = por %p1046_p2, %p1045_p1 }
  0x63   : > { %p1043_p0 = pneg %p1042_p12 }
  0x64   : > { %p1049_p13 = por %p1048_p8, %p1047_p4 }
  0x66   : > { %p1050_p6 = pnand %p1049_p13, %p1043_p0 }
  0x68   : > { %1053 = shalt.err (!%p1050_p6)
}
  0x69   : > { %s1054_s20 = scalar_lea.vmem %s1363_s10, 64  ;;  %s1150_s15 = smov [#allocation2]  }
  0x6a   : > { %p1055_p10 = scmp.ne.s32.totalorder %s1363_s10, %s1054_s20  ;;  %s1059_s29 = sshll.u32 %s1150_s15, 4  ;;  %s1060_s29 = int_to_ptr.vmem [resolvable:$false] %s1059_s29 }
  0x6b   : > { %s1061_s12 = scalar_lea.vmem %s1060_s29, 128  ;;  %p1062_p12 = scmp.lt.s32.totalorder %s1363_s10, %s1060_s29 }
  0x6c   : > { %p1057_p3 = pnand %p1055_p10, %p1041_p9  ;;  %p1063_p1 = scmp.lt.s32.totalorder %s1061_s12, %s1054_s20 }
  0x6e   : > { %p1058_p7 = pneg %p1057_p3  ;;  %p1064_p2 = por %p1063_p1, %p1062_p12 }
  0x70   : > { %p1065_p4 = pnand %p1064_p2, %p1058_p7 }
  0x72   : > { %1068 = shalt.err (!%p1065_p4)
}
  0x73   : > { %885 = dma.hbm_to_vmem [thread:$0]  (!%p1359_p11), %s1357_s23, 64, %s1363_s10, %s270_s14  }
  0x74   : > { %p1512_p0 = scmp.ne.s32.totalorder %s1506_s9, 0 }
  0x75   : > { %s1393_s8 = sand.u32 (!%p1512_p0), 1, %s1135_s25   ;;  %p1513_p9 = scmp.ne.s32.totalorder (!%p1512_p0), %s1503_s30, 0 }
  0x76   : > { %289 = sbr.rel (%p1512_p0) target bundleno = 806 (0x326), region = 48  ;;  %s756_s17 = sshll.u32 (!%p1512_p0), %s1393_s8, 2 }
  0x77   : > { %s292_s21 = scalar_lea.sflag (!%p1512_p0), [#allocation3], %s1393_s8  ;;  %s295_s16 = scalar_lea.vmem (!%p1512_p0), [#allocation2], %s756_s17 }
  0x7d   : > { %1114 = dma.done.wait (%p1513_p9), %s292_s21, 64  }
  0x7e   : > { %1116 = vsyncadd (%p1513_p9), %s292_s21, 4294967232  ;;  %p1514_p8 = scmp.eq.s32.totalorder %s1215_s28, 0 }
  0x80   : > { %1118 = dma.done.wait (%p1514_p8), [#allocation6], 1280   ;;  %p1515_p11 = pmov %p1514_p8 }
  0x81   : > { %p1516_p13 = pmov %p1514_p8 }
  0x82   : > { %1120 = vsyncadd (%p1515_p11), [#allocation6], 4294966016 }
  0x83   : > { %1122 = dma.done.wait (%p1516_p13), [#allocation9], 1024   ;;  %p1517_p6 = pmov %p1514_p8 }
  0x84   : > { %v1151_v0 = vmov 0.0   ;;  %vm1152_vm0 = vmmov 0   ;;  %v937_v1 = vld [vmem:[#allocation5] sm:$0xff]   ;;  %v938_v2 = vld [vmem:[#allocation5 + $0x8] sm:$0xff]   ;;  %v939_v3 = vld [vmem:[#allocation7] sm:$0xff]   ;;  %vm363_vm1 = vcmask 261120  }
  0x85   : > { %1124 = vsyncadd (%p1517_p6), [#allocation9], 4294966272  ;;  %808 = vmatprep.subr.bf16.mxu0 %v1151_v0  ;;  %812 = vmatprep.mubr.msk.bf16.mxu0 %vm1152_vm0, %v1151_v0  ;;  %v940_v4 = vld [vmem:[#allocation7 + $0x8] sm:$0xff]   ;;  %v941_v6 = vld [vmem:[#allocation7 + $0x10] sm:$0xff]   ;;  %s760_s11 = sshll.u32 %s1393_s8, 3  ;;  %s784_s20 = sshll.u32 %s1215_s28, 7 }
  0x86   : > { %816 = vmatprep.subr.bf16.mxu1 %v1151_v0  ;;  %832 = vmatprep.mubr.msk.bf16.mxu1 %vm1152_vm0, %v1151_v0  ;;  %v339_v5 = vld [vmem:[%s295_s16] sm:$0xf]  ;;  %v942_v7 = vld [vmem:[#allocation7 + $0x18] sm:$0xff]   ;;  %v943_v8 = vld [vmem:[#allocation7 + $0x20] sm:$0xff]   ;;  %s337_s15 = scalar_lea.vmem [#allocation10], %s760_s11  ;;  %s1447_s21 = scalar_lea.hbm %s1498_s7, %s784_s20 }
  0x87   : > { %809 = vmatpush3.bf16.msra.mxu0 %v937_v1  ;;  %817 = vmatpush3.bf16.msra.mxu1 %v939_v3  ;;  %v944_v9 = vld [vmem:[#allocation7 + $0x28] sm:$0xff]   ;;  %v945_v10 = vld [vmem:[#allocation7 + $0x30] sm:$0xff]   ;;  %v946_v11 = vld [vmem:[#allocation7 + $0x38] sm:$0xff]   ;;  %s648_s29 = sshll.u32 %s337_s15, 4  ;;  %s635_s16 = scalar_lea.sflag [#allocation4], %s1393_s8  ;;  %s1449_s29 = int_to_ptr.vmem [resolvable:$true] %s648_s29 }
  0x88   : > { %810 = vmatprep.subr.bf16.mxu0 %v1151_v0  ;;  %818 = vmatprep.subr.bf16.mxu1 %v1151_v0  ;;  %v947_v12 = vld [vmem:[#allocation8] sm:$0xff]   ;;  %v948_v13 = vld [vmem:[#allocation8 + $0x8] sm:$0xff]   ;;  %v949_v14 = vld [vmem:[#allocation8 + $0x10] sm:$0xff]   ;;  %s1069_s28 = scalar_lea.vmem %s1449_s29, 128  ;;  %s1153_s30 = smov [#allocation10]  }
  0x89   : > { %v950_v15 = vld [vmem:[#allocation8 + $0x18] sm:$0xff]   ;;  %v951_v16 = vld [vmem:[#allocation8 + $0x20] sm:$0xff]   ;;  %v952_v17 = vld [vmem:[#allocation8 + $0x28] sm:$0xff]   ;;  %p1070_p10 = scmp.ne.s32.totalorder %s1449_s29, %s1069_s28  ;;  %s1073_s9 = sshll.u32 %s1153_s30, 4  ;;  %s1074_s9 = int_to_ptr.vmem [resolvable:$false] %s1073_s9 }
  0x8a   : > { %v761_v18 = vld [vmem:[%s1493_s2] ss:$0 sm:$0xff]  ;;  %v953_v26 = vld [vmem:[#allocation8 + $0x30] sm:$0xff]   ;;  %v954_v27 = vld [vmem:[#allocation8 + $0x38] sm:$0xff]   ;;  %s1075_s23 = scalar_lea.vmem %s1074_s9, 256  ;;  %p1076_p12 = scmp.lt.s32.totalorder %s1449_s29, %s1074_s9 }
  0x8b   : > { %811 = vmatpush3.bf16.msra.mxu0 %v938_v2  ;;  %819 = vmatpush3.bf16.msra.mxu1 %v940_v4  ;;  %v765_v28 = vld [vmem:[%s1495_s4] ss:$0 sm:$0xff]  ;;  %p1071_p3 = pnand %p1070_p10, %p1348_p5  ;;  %p1077_p1 = scmp.lt.s32.totalorder %s1075_s23, %s1069_s28 }
  0x8c   : > { %836 = vmatprep.subr.bf16.mxu0 %v1151_v0  ;;  %820 = vmatprep.subr.bf16.mxu1 %v1151_v0  ;;  %v774_v36 = vld [vmem:[%s1497_s6] ss:$0 sm:$0xff] }
  0x8d   : > { %p1072_p7 = pneg %p1071_p3  ;;  %p1078_p2 = por %p1077_p1, %p1076_p12 }
  0x8e   : > { %813 = vmatmul.mubr.msk.bf16.vlgmr.msra.gmra.mrb[0].mxu0 %vm363_vm1, %v339_v5 }
  0x8f   : > { %852 = vmatprep.mubr.msk.bf16.mxu0 %vm1152_vm0, %v1151_v0  ;;  %821 = vmatpush3.bf16.msra.mxu1 %v941_v6  ;;  %p1079_p4 = pnand %p1078_p2, %p1072_p7 }
  0x90   : > { %822 = vmatprep.subr.bf16.mxu1 %v1151_v0  ;;  %837 = vmatpush3.bf16.msra.mxu0 %v947_v12 }
  0x91   : > { %838 = vmatprep.subr.bf16.mxu0 %v1151_v0 }
  0x93   : > { %823 = vmatpush3.bf16.msra.mxu1 %v942_v7 }
  0x94   : > { %824 = vmatprep.subr.bf16.mxu1 %v1151_v0  ;;  %839 = vmatpush3.bf16.msra.mxu0 %v948_v13 }
  0x95   : > { %840 = vmatprep.subr.bf16.mxu0 %v1151_v0 }
  0x97   : > { %825 = vmatpush3.bf16.msra.mxu1 %v943_v8 }
  0x98   : > { %826 = vmatprep.subr.bf16.mxu1 %v1151_v0  ;;  %841 = vmatpush3.bf16.msra.mxu0 %v949_v14 }
  0x99   : > { %842 = vmatprep.subr.bf16.mxu0 %v1151_v0 }
  0x9b   : > { %827 = vmatpush3.bf16.msra.mxu1 %v944_v9 }
  0x9c   : > { %828 = vmatprep.subr.bf16.mxu1 %v1151_v0  ;;  %843 = vmatpush3.bf16.msra.mxu0 %v950_v15 }
  0x9d   : > { %844 = vmatprep.subr.bf16.mxu0 %v1151_v0 }
  0x9f   : > { %829 = vmatpush3.bf16.msra.mxu1 %v945_v10 }
  0xa0   : > { %830 = vmatprep.subr.bf16.mxu1 %v1151_v0  ;;  %845 = vmatpush3.bf16.msra.mxu0 %v951_v16 }
  0xa1   : > { %846 = vmatprep.subr.bf16.mxu0 %v1151_v0 }
  0xa3   : > { %831 = vmatpush3.bf16.msra.mxu1 %v946_v11 }
  0xa4   : > { %847 = vmatpush3.bf16.msra.mxu0 %v952_v17 }
  0xa5   : > { %848 = vmatprep.subr.bf16.mxu0 %v1151_v0 }
  0xa8   : > { %849 = vmatpush3.bf16.msra.mxu0 %v953_v26 }
  0xa9   : > { %850 = vmatprep.subr.bf16.mxu0 %v1151_v0 }
  0xac   : > { %851 = vmatpush3.bf16.msra.mxu0 %v954_v27 }
 0x161   : > { %v401_v19 = vpop.f32.mrb[0].mxu0 }
 0x162   : > { %v402_v20 = vadd.f32 %v761_v18, %v401_v19  ;;  %v814_v21 = vpop.f32.mrb[1].mxu0 }
 0x163   : > { %v404_v22 = vpop.f32.mrb[2].mxu0 }
 0x164   : > { %v407_v23 = vmax.f32 %v402_v20, 0.0  ;;  %v815_v24 = vpop.f32.mrb[3].mxu0 }
 0x166   : > { %v408_v25 = vpack.c.bf16 %v407_v23, %v407_v23 }
 0x168   : > { %833 = vmatmul.mubr.bf16.vlgmr.msra.gmra.mrb[0].mxu1 %v408_v25 }
 0x23b   : > { %v514_v29 = vpop.f32.mrb[0].mxu1 }
 0x23c   : > { %v515_v30 = vadd.f32 %v765_v28, %v514_v29  ;;  %v834_v31 = vpop.f32.mrb[1].mxu1 }
 0x23d   : > { %v517_v32 = vpop.f32.mrb[2].mxu1 }
 0x23e   : > { %v520_v33 = vmax.f32 %v515_v30, 0.0  ;;  %v835_v34 = vpop.f32.mrb[3].mxu1 }
 0x240   : > { %v521_v35 = vpack.c.bf16 %v520_v33, %v520_v33 }
 0x242   : > { %853 = vmatmul.mubr.bf16.vlgmr.msra.gmra.mrb[4].mxu0 %v521_v35 }
 0x315   : > { %v627_v37 = vpop.f32.mrb[4].mxu0 }
 0x316   : > { %v628_v38 = vadd.f32 %v774_v36, %v627_v37  ;;  %v854_v39 = vpop.f32.mrb[5].mxu0 }
 0x317   : > { %v630_v40 = vpop.f32.mrb[6].mxu0 }
 0x318   : > { %633 = vst [vmem:[%s337_s15] sm:$0xff] %v628_v38  ;;  %v855_v41 = vpop.f32.mrb[7].mxu0 }
 0x319   : > { %1082 = shalt.err (!%p1079_p4)
}
 0x31a   : > { %s1083_s8 = scalar_lea.hbm %s1447_s21, 128  ;;  %s1087_s14 = scalar_lea.hbm %s1498_s7, 256 }
 0x31b   : > { %p1084_p0 = scmp.ne.s32.totalorder %s1447_s21, %s1083_s8  ;;  %p1088_p11 = scmp.lt.u32.totalorder %s1447_s21, %s1498_s7 }
 0x31c   : > { %p1089_p13 = scmp.lt.u32.totalorder %s1087_s14, %s1083_s8  ;;  %p1091_p10 = scmp.lt.u32.totalorder %s1083_s8, %s1447_s21 }
 0x31d   : > { %p1085_p9 = pnand %p1084_p0, %p1348_p5 }
 0x31e   : > { %p1090_p6 = por %p1089_p13, %p1088_p11 }
 0x31f   : > { %p1086_p8 = pneg %p1085_p9 }
 0x320   : > { %p1092_p3 = por %p1091_p10, %p1090_p6 }
 0x322   : > { %p1093_p7 = pnand %p1092_p3, %p1086_p8 }
 0x324   : > { %1096 = shalt.err (!%p1093_p7)
}
 0x325   : > { %870 = dma.vmem_to_hbm [thread:$0]  (%p1348_p5), %s1449_s29, 128, %s1447_s21, %s635_s16  }
 0x326 PF: > { %s1518_s15 = sld [smem:[#allocation15_spill]]  ;;  %s660_s12 = sand.u32 1, %s1131_s24  }
 0x327   : > { %p1520_p1 = scmp.ge.s32.totalorder %s1143_s27, 2  ;;  %s661_s17 = scalar_lea.sflag [#allocation4], %s660_s12 }
 0x32c   : > { %p1519_p12 = scmp.ne.s32.totalorder %s1518_s15, 0 }
 0x32e   : > { %p887_p2 = pnand %p1520_p1, %p1519_p12 }
 0x330   : > { %1126 = dma.done.wait (!%p887_p2), %s661_s17, 128  }
 0x331   : > { %1128 = vsyncadd (!%p887_p2), %s661_s17, 4294967168  ;;  %p22_p4 = scmp.ge.s32.totalorder %s1334_s22, 4   ;;  %s1521_s24 = smov %s1135_s25 }
 0x332   : > { %s1522_s25 = smov %s1139_s26  ;;  %s1523_s26 = smov %s1344_s18 }
 0x333   : > { %s1524_s27 = smov %s1334_s22  ;;  %24 = sbr.rel (!%p22_p4) target bundleno = 7 (0x7), region = 105 }
 0x33a   :  { %666 = vsyncpa [#allocation3], 1 }
 0x33b   :  { %668 = vsyncpa [#allocation3 + $0x1], 1 }
 0x33c   :  { %669 = vsyncpa [#allocation6], 1 }
 0x33d   :  { %670 = vsyncpa [#allocation9], 1 }
 0x33e   :  { %671 = vsyncpa [#allocation4], 1 }
 0x33f   :  { %673 = vsyncpa [#allocation4 + $0x1], 1 }

</bundles_post_ra>
